<compile_context>
chip_gen: v7x
topology: tpu7x:2x2x1
jax: 0.10.0
libtpu: 0.0.40
codegen_flags: <defaults>
</compile_context>

<pallas_src>
import jax
import jax.numpy as jnp
from jax.experimental import pallas as pl
from jax.experimental.pallas import tpu as pltpu

WORD_SIZE = 32
NUM_READS = 1
NUM_WRITES = 1

# Column layout of the interface vector (row-major, feature axis -> lanes).
_R, _Wd, _Wr = NUM_READS, WORD_SIZE, NUM_WRITES
RK_OFF = 0                                   # read keys      (R*Wd)
RS_OFF = RK_OFF + _R * _Wd                   # read strengths (R)
WK_OFF = RS_OFF + _R                         # write key      (Wr*Wd)
WS_OFF = WK_OFF + _Wr * _Wd                  # write strength (Wr)
EV_OFF = WS_OFF + _Wr                        # erase vector   (Wr*Wd)  sigmoid
WV_OFF = EV_OFF + _Wr * _Wd                  # write vector   (Wr*Wd)
FG_OFF = WV_OFF + _Wr * _Wd                  # free gates     (R)      sigmoid
AG_OFF = FG_OFF + _R                         # alloc gate     (Wr)     sigmoid
WG_OFF = AG_OFF + _Wr                        # write gate     (Wr)     sigmoid
RM_OFF = WG_OFF + _Wr                        # read modes     (R*3)    softmax
INTF_DIM = RM_OFF + _R * 3                   # = 136 for defaults


def _interface_kernel(x_ref, o_ref):
    """x_ref/o_ref: (TB, INTF_DIM) float32 VMEM blocks."""
    x = x_ref[...]
    feat = x.shape[-1]

    # Lane-index mask for the sigmoid column ranges:
    #   erase_vec  -> [EV_OFF, EV_OFF + Wr*Wd)
    #   fg/ag/wg   -> [FG_OFF, RM_OFF)        (contiguous)
    lane = jax.lax.broadcasted_iota(jnp.int32, (1, feat), 1)
    sig_mask = ((lane >= EV_OFF) & (lane < EV_OFF + NUM_WRITES * WORD_SIZE)) | \
               ((lane >= FG_OFF) & (lane < RM_OFF))

    # Passthrough everywhere; stable sigmoid on the gated columns.
    y = jnp.where(sig_mask, jax.nn.sigmoid(x), x)

    # BatchSoftmax over the 3 read modes of each read head.  R is tiny and
    # static, so use explicit lane slices (VPU-only; no reshape / XLU reduce).
    for h in range(NUM_READS):
        c = RM_OFF + 3 * h
        r0 = x[:, c + 0:c + 1]
        r1 = x[:, c + 1:c + 2]
        r2 = x[:, c + 2:c + 3]
        m = jnp.maximum(jnp.maximum(r0, r1), r2)
        e0 = jnp.exp(r0 - m)
        e1 = jnp.exp(r1 - m)
        e2 = jnp.exp(r2 - m)
        inv = 1.0 / (e0 + e1 + e2)
        y = jnp.where(lane == c + 0, e0 * inv, y)
        y = jnp.where(lane == c + 1, e1 * inv, y)
        y = jnp.where(lane == c + 2, e2 * inv, y)

    o_ref[...] = y                      # single lane-dense store / output DMA


def interface_forward(inputs, *, max_block_b=512):
    """inputs: (B, INTF_DIM) float32. Returns the 10 chunked outputs."""
    B, feat = inputs.shape
    assert feat == INTF_DIM, (feat, INTF_DIM)
    R, Wd, Wr = NUM_READS, WORD_SIZE, NUM_WRITES

    # Batch tile: full batch when small (block == full dim is always legal);
    # otherwise a multiple-of-8 tile that keeps VMEM tiny and pipelined.
    tb = B if B <= max_block_b else max_block_b
    grid = (pl.cdiv(B, tb),)

    packed = pl.pallas_call(
        _interface_kernel,
        out_shape=jax.ShapeDtypeStruct((B, feat), jnp.float32),
        grid=grid,
        in_specs=[pl.BlockSpec((tb, feat), lambda i: (i, 0))],
        out_specs=pl.BlockSpec((tb, feat), lambda i: (i, 0)),
        compiler_params=pltpu.CompilerParams(
            dimension_semantics=("parallel",)),
    )(inputs)

    # Wrapper-side chunking/reshaping (plain XLA slices of the packed output).
    off = 0

    def take(n):
        nonlocal off
        out = packed[:, off:off + n]
        off += n
        return out

    read_keys = take(R * Wd).reshape(B, R, Wd)
    read_strn = take(R)
    write_key = take(Wr * Wd).reshape(B, Wr, Wd)
    write_str = take(Wr)
    erase_vec = take(Wr * Wd).reshape(B, Wr, Wd)   # sigmoid applied in kernel
    write_vec = take(Wr * Wd).reshape(B, Wr, Wd)
    free_gates = take(R)                           # sigmoid
    alloc_gate = take(Wr)                          # sigmoid
    write_gate = take(Wr)                          # sigmoid
    read_modes = take(R * 3).reshape(B, R, 3)      # softmax over 3 modes

    return [read_keys, read_strn, write_key, write_str, erase_vec, write_vec,
            free_gates, alloc_gate, write_gate, read_modes]


def _reference(inputs):
    """Pure-JAX reference mirroring the PyTorch forward."""
    B = inputs.shape[0]
    R, Wd, Wr = NUM_READS, WORD_SIZE, NUM_WRITES
    off = 0

    def take(n):
        nonlocal off
        out = inputs[:, off:off + n]
        off += n
        return out

    rk = take(R * Wd).reshape(B, R, Wd)
    rs = take(R)
    wk = take(Wr * Wd).reshape(B, Wr, Wd)
    ws = take(Wr)
    ev = jax.nn.sigmoid(take(Wr * Wd).reshape(B, Wr, Wd))
    wv = take(Wr * Wd).reshape(B, Wr, Wd)
    fg = jax.nn.sigmoid(take(R))
    ag = jax.nn.sigmoid(take(Wr))
    wg = jax.nn.sigmoid(take(Wr))
    rm = jax.nn.softmax(take(R * 3).reshape(B, R, 3), axis=-1)
    return [rk, rs, wk, ws, ev, wv, fg, ag, wg, rm]


if __name__ == "__main__":
    key = jax.random.PRNGKey(0)
    B = 2
    x = jax.random.normal(key, (B, INTF_DIM), dtype=jnp.float32)

    outs = interface_forward(x)
    outs = jax.block_until_ready(outs)

    refs = _reference(x)
    for o, r in zip(outs, refs):
        assert o.shape == r.shape, (o.shape, r.shape)
        assert jnp.allclose(o, r, atol=1e-5, rtol=1e-5)

    print("KERNEL_OK")
</pallas_src>

<mosaic_0001>
module attributes {stable_mosaic.version = 11 : i64} {
  func.func @_interface_kernel(%arg0: i32, %arg1: memref<2x136xf32, #tpu.memory_space<vmem>>, %arg2: memref<2x136xf32, #tpu.memory_space<vmem>>) attributes {dimension_semantics = [#tpu.dimension_semantics<parallel>], iteration_bounds = array<i64: 1>, scalar_prefetch = 0 : i64, scratch_operands = 0 : i64, tpu.core_type = #tpu.core_type<tc>, window_params = [{transform_indices = @transform_0, window_bounds = array<i64: 2, 136>}, {transform_indices = @transform_1, window_bounds = array<i64: 2, 136>}]} {
    %c0 = arith.constant 0 : index
    %c0_0 = arith.constant 0 : index
    %0 = vector.load %arg1[%c0, %c0_0] : memref<2x136xf32, #tpu.memory_space<vmem>>, vector<2x136xf32>
    %1 = tpu.iota {dimensions = array<i32: 1>} : vector<1x136xi32>
    %c66_i32 = arith.constant 66 : i32
    %2 = vector.broadcast %c66_i32 : i32 to vector<1x136xi32>
    %3 = arith.cmpi sge, %1, %2 : vector<1x136xi32>
    %c98_i32 = arith.constant 98 : i32
    %4 = vector.broadcast %c98_i32 : i32 to vector<1x136xi32>
    %5 = arith.cmpi slt, %1, %4 : vector<1x136xi32>
    %6 = arith.andi %3, %5 : vector<1x136xi1>
    %c130_i32 = arith.constant 130 : i32
    %7 = vector.broadcast %c130_i32 : i32 to vector<1x136xi32>
    %8 = arith.cmpi sge, %1, %7 : vector<1x136xi32>
    %c133_i32 = arith.constant 133 : i32
    %9 = vector.broadcast %c133_i32 : i32 to vector<1x136xi32>
    %10 = arith.cmpi slt, %1, %9 : vector<1x136xi32>
    %11 = arith.andi %8, %10 : vector<1x136xi1>
    %12 = arith.ori %6, %11 : vector<1x136xi1>
    %13 = arith.negf %0 : vector<2x136xf32>
    %14 = math.exp %13 : vector<2x136xf32>
    %cst = arith.constant 1.000000e+00 : f32
    %15 = vector.broadcast %cst : f32 to vector<2x136xf32>
    %16 = arith.addf %15, %14 : vector<2x136xf32>
    %17 = arith.divf %15, %16 : vector<2x136xf32>
    %18 = vector.shape_cast %12 : vector<1x136xi1> to vector<1x136xi1>
    %19 = vector.broadcast %18 : vector<1x136xi1> to vector<2x136xi1>
    %20 = arith.select %19, %17, %0 : vector<2x136xi1>, vector<2x136xf32>
    %21 = vector.extract_strided_slice %0 {offsets = [0, 133], sizes = [2, 1], strides = [1, 1]} : vector<2x136xf32> to vector<2x1xf32>
    %22 = vector.extract_strided_slice %0 {offsets = [0, 134], sizes = [2, 1], strides = [1, 1]} : vector<2x136xf32> to vector<2x1xf32>
    %23 = vector.extract_strided_slice %0 {offsets = [0, 135], sizes = [2, 1], strides = [1, 1]} : vector<2x136xf32> to vector<2x1xf32>
    %24 = arith.maximumf %21, %22 : vector<2x1xf32>
    %25 = arith.maximumf %24, %23 : vector<2x1xf32>
    %26 = arith.subf %21, %25 : vector<2x1xf32>
    %27 = math.exp %26 : vector<2x1xf32>
    %28 = arith.subf %22, %25 : vector<2x1xf32>
    %29 = math.exp %28 : vector<2x1xf32>
    %30 = arith.subf %23, %25 : vector<2x1xf32>
    %31 = math.exp %30 : vector<2x1xf32>
    %32 = arith.addf %27, %29 : vector<2x1xf32>
    %33 = arith.addf %32, %31 : vector<2x1xf32>
    %cst_1 = arith.constant 1.000000e+00 : f32
    %34 = vector.broadcast %cst_1 : f32 to vector<2x1xf32>
    %35 = arith.divf %34, %33 : vector<2x1xf32>
    %c133_i32_2 = arith.constant 133 : i32
    %36 = vector.broadcast %c133_i32_2 : i32 to vector<1x136xi32>
    %37 = arith.cmpi eq, %1, %36 : vector<1x136xi32>
    %38 = arith.mulf %27, %35 : vector<2x1xf32>
    %39 = vector.shape_cast %37 : vector<1x136xi1> to vector<1x136xi1>
    %40 = vector.broadcast %39 : vector<1x136xi1> to vector<2x136xi1>
    %41 = vector.shape_cast %38 : vector<2x1xf32> to vector<2x1xf32>
    %42 = vector.broadcast %41 : vector<2x1xf32> to vector<2x136xf32>
    %43 = arith.select %40, %42, %20 : vector<2x136xi1>, vector<2x136xf32>
    %c134_i32 = arith.constant 134 : i32
    %44 = vector.broadcast %c134_i32 : i32 to vector<1x136xi32>
    %45 = arith.cmpi eq, %1, %44 : vector<1x136xi32>
    %46 = arith.mulf %29, %35 : vector<2x1xf32>
    %47 = vector.shape_cast %45 : vector<1x136xi1> to vector<1x136xi1>
    %48 = vector.broadcast %47 : vector<1x136xi1> to vector<2x136xi1>
    %49 = vector.shape_cast %46 : vector<2x1xf32> to vector<2x1xf32>
    %50 = vector.broadcast %49 : vector<2x1xf32> to vector<2x136xf32>
    %51 = arith.select %48, %50, %43 : vector<2x136xi1>, vector<2x136xf32>
    %c135_i32 = arith.constant 135 : i32
    %52 = vector.broadcast %c135_i32 : i32 to vector<1x136xi32>
    %53 = arith.cmpi eq, %1, %52 : vector<1x136xi32>
    %54 = arith.mulf %31, %35 : vector<2x1xf32>
    %55 = vector.shape_cast %53 : vector<1x136xi1> to vector<1x136xi1>
    %56 = vector.broadcast %55 : vector<1x136xi1> to vector<2x136xi1>
    %57 = vector.shape_cast %54 : vector<2x1xf32> to vector<2x1xf32>
    %58 = vector.broadcast %57 : vector<2x1xf32> to vector<2x136xf32>
    %59 = arith.select %56, %58, %51 : vector<2x136xi1>, vector<2x136xf32>
    %c0_3 = arith.constant 0 : index
    %c0_4 = arith.constant 0 : index
    %60 = vector.load %arg2[%c0_3, %c0_4] : memref<2x136xf32, #tpu.memory_space<vmem>>, vector<2x136xf32>
    tpu.vector_store %arg2[%c0_3, %c0_4], %59 {strides = array<i32>} : memref<2x136xf32, #tpu.memory_space<vmem>>, vector<2x136xf32>,
    return
  }
  func.func @transform_0(%arg0: i32) -> (i32, i32) {
    %c0_i32 = arith.constant 0 : i32
    %c0_i32_0 = arith.constant 0 : i32
    return %arg0, %c0_i32 : i32, i32
  }
  func.func @transform_1(%arg0: i32) -> (i32, i32) {
    %c0_i32 = arith.constant 0 : i32
    %c0_i32_0 = arith.constant 0 : i32
    return %arg0, %c0_i32 : i32, i32
  }
}

</mosaic_0001>

<bundles_post_ra>
// kernel: tpu_custom_call.1
= control target key start
LH: loop header
LB: loop body
LE: loop exit
PB: predicated region body
PF: predicated region fallthrough
CT: control target
= control target key end

     0   :  { %6 = vsyncpa [#allocation3], 0  ;;  %s339_s0 = inlined_call_operand.hbm [shape: f32[2,136], index: 0, kind: input, shape index: {}]   ;;  %s340_s1 = inlined_call_operand.hbm [shape: f32[2,136], index: 1, kind: output, shape index: {}]  }
   0x1   :  { %7 = vsyncpa [#allocation4], 0  ;;  %s297_s6 = smov [#allocation2]   ;;  %s249_s10 = scalar_lea.hbm %s339_s0, 64 }
   0x2   :  { %s14_s7 = sshll.u32 %s297_s6, 4  ;;  %p250_p0 = scmp.ne.s32.totalorder %s339_s0, %s249_s10  ;;  %s15_s7 = int_to_ptr.vmem [resolvable:$true] %s14_s7 }
   0x3   :  { %p253_p1 = scmp.lt.u32.totalorder %s249_s10, %s339_s0 }
   0x5   :  { %p255_p2 = pnand %p253_p1, %p250_p0 }
   0x7   :  { %258 = shalt.err (!%p255_p2)
}
   0x8   :  { %s259_s15 = scalar_lea.vmem %s15_s7, 64  ;;  %p264_p4 = scmp.lt.s32.totalorder %s15_s7, %s15_s7 }
   0x9   :  { %p260_p3 = scmp.ne.s32.totalorder %s15_s7, %s259_s15  ;;  %p265_p5 = scmp.lt.s32.totalorder %s259_s15, %s259_s15 }
   0xb   :  { %p266_p6 = por %p265_p5, %p264_p4 }
   0xd   :  { %p267_p7 = pnand %p266_p6, %p260_p3 }
   0xf   :  { %270 = shalt.err (!%p267_p7)
}
  0x10   :  { %17 = dma.hbm_to_vmem [thread:$0]  %s339_s0, 64, %s15_s7, [#allocation3]  }
  0x11   :  { %293 = dma.done.wait [#allocation3], 64  }
  0x12   :  { %294 = vsyncadd [#allocation3], 4294967232  ;;  %v21_v0 = vld [vmem:[#allocation2] sm:$0xf]  ;;  %s298_s18 = smov 123   ;;  %s299_s19 = smov 121   ;;  %v22_v28 = vlaneseq }
  0x13   :  { %73 = vrot.lane.b32.xlu0 %v21_v0, %s298_s18  ;;  %82 = vrot.lane.b32.xlu1 %v21_v0, %s299_s19  ;;  %s300_s20 = smov 122   ;;  %v301_v1 = vmov 0   ;;  %v226_v25 = vmul.f32 -1.442695, %v21_v0  ;;  %v302_v29 = vmov 1983009808  }
  0x14   :  { %236 = vset.pattern.permute.xlu0 %v301_v1  ;;  %235 = vset.pattern.permute.xlu1 %v301_v1  ;;  %v51_v30 = vunpack.c.l.s4 %v302_v29  ;;  %v54_v32 = vshrl.u32 %v22_v28, 7  ;;  %v303_v33 = vmov 269488144   ;;  %v23_v35 = vand.u32 127, %v22_v28  ;;  %s304_s0 = smov [#allocation5]  }
  0x15   :  { %v113_v34 = vunpack.c.l.s4 %v303_v33  ;;  %vm207_vm9 = vcmask 1041408   ;;  %vm208_vm10 = vcmask 60418   ;;  %s217_s21 = sshll.u32 %s304_s0, 4  ;;  %s218_s21 = int_to_ptr.vmem [resolvable:$true] %s217_s21 }
  0x16   :  { %v52_v31 = vunpack.c.0.s8 %v51_v30  ;;  %v24_v39 = vadd.s32 128, %v23_v35  ;;  %vm25_vm3 = vcmp.ge.s32.totalorder %v23_v35, 66  ;;  %vm27_vm4 = vcmp.lt.s32.totalorder %v23_v35, 98  ;;  %vm209_vm11 = vmor %vm208_vm10, %vm207_vm9  ;;  %s271_s22 = scalar_lea.vmem %s218_s21, 64  ;;  %p276_p9 = scmp.lt.s32.totalorder %s218_s21, %s218_s21 }
  0x17   :  { %77 = vrot.lane.b32.xlu0 %v21_v0, %s300_s20  ;;  %v114_v38 = vunpack.c.0.s8 %v113_v34  ;;  %vm29_vm6 = vmand %vm25_vm3, %vm27_vm4  ;;  %p272_p8 = scmp.ne.s32.totalorder %s218_s21, %s271_s22  ;;  %p277_p10 = scmp.lt.s32.totalorder %s271_s22, %s271_s22 }
  0x18   :  { %v55_v36 = vsub.s32 %v52_v31, %v54_v32  ;;  %vm32_vm0 = vcmp.ge.s32.totalorder %v24_v39, 130  ;;  %vm34_vm1 = vcmp.lt.s32.totalorder %v24_v39, 133  ;;  %vm101_vm5 = vcmp.eq.s32.totalorder %v24_v39, 133 }
  0x19   :  { %v117_v42 = vsub.s32 %v114_v38, %v54_v32  ;;  %vm36_vm2 = vmand %vm32_vm0, %vm34_vm1  ;;  %vm133_vm7 = vcmp.eq.s32.totalorder %v24_v39, 134  ;;  %vm165_vm8 = vcmp.eq.s32.totalorder %v24_v39, 135  ;;  %p278_p11 = por %p277_p10, %p276_p9 }
  0x1a   :  { %v67_v41 = vrot.slane %v21_v0, %v55_v36 }
  0x1b   :  { %p279_p12 = pnand %p278_p11, %p272_p8 }
  0x1c   :  { %v68_v46 = vcombine.high %v67_v41, %v67_v41 }
  0x85   :  { %v74_v2 = vpop.permute.xlu0 %73  ;;  %v83_v3 = vpop.permute.xlu1 %82 }
  0x86   :  { %v75_v5 = vrot.slane %v74_v2, 2  ;;  %v84_v7 = vrot.slane %v83_v3, 2 }
  0x89   :  { %v78_v4 = vpop.permute.xlu0 %77 }
  0x8a   :  { %v79_v6 = vrot.slane %v78_v4, 2 }
  0x8c   :  { %v81_v8 = vmax.f32 %v75_v5, %v79_v6 }
  0x8e   :  { %v86_v9 = vmax.f32 %v81_v8, %v84_v7 }
  0x90   :  { %v87_v10 = vsub.f32 %v75_v5, %v86_v9  ;;  %v90_v11 = vsub.f32 %v79_v6, %v86_v9  ;;  %v93_v12 = vsub.f32 %v84_v7, %v86_v9 }
  0x92   :  { %v88_v13 = vmul.f32 1.442695, %v87_v10  ;;  %v91_v14 = vmul.f32 1.442695, %v90_v11  ;;  %v94_v15 = vmul.f32 1.442695, %v93_v12 }
  0x94   :  { %237 = vpow2.f32 %v88_v13 }
  0x95   :  { %239 = vpow2.f32 %v91_v14 }
  0x96   :  { %241 = vpow2.f32 %v94_v15 }
  0x9e   :  { %v238_v16 = vpop.eup %237 }
  0x9f   :  { %v240_v17 = vpop.eup %239 }
  0xa0   :  { %v96_v18 = vadd.f32 %v240_v17, %v238_v16  ;;  %v242_v19 = vpop.eup %241 }
  0xa2   :  { %v97_v20 = vadd.f32 %v242_v19, %v96_v18 }
  0xa4   :  { %243 = vrcp.f32 %v97_v20 }
  0xa5   :  { %245 = vpow2.f32 %v226_v25 }
  0xae   :  { %v244_v21 = vpop.eup %243 }
  0xaf   :  { %v134_v22 = vmul.f32 %v244_v21, %v240_v17  ;;  %v102_v23 = vmul.f32 %v244_v21, %v238_v16  ;;  %v166_v24 = vmul.f32 %v244_v21, %v242_v19  ;;  %v246_v26 = vpop.eup %245 }
  0xb0   :  { %v42_v27 = vadd.f32 1.0, %v246_v26 }
  0xb1   :  { %141 = vperm.xlu0 %236, %v134_v22   ;;  %109 = vperm.xlu1 %235, %v102_v23  }
  0xb2   :  { %247 = vrcp.f32 %v42_v27 }
  0xb5   :  { %173 = vperm.xlu1 %235, %v166_v24  }
  0xbc   :  { %v248_v37 = vpop.eup %247 }
  0xbd   :  { %v56_v40 = vrot.slane %v248_v37, %v55_v36 }
  0xbf   :  { %v57_v45 = vcombine.high %v56_v40, %v56_v40  ;;  %v71_v59 = vsel %vm29_vm6, %v56_v40, %v67_v41 }
  0xc1   :  { %v72_v51 = vsel %vm36_vm2, %v57_v45, %v68_v46 }
 0x130   :  { %v142_v43 = vpop.permute.xlu0 %141  ;;  %v110_v44 = vpop.permute.xlu1 %109 }
 0x131   :  { %v150_v47 = vrot.slane %v142_v43, %v117_v42  ;;  %v118_v48 = vrot.slane %v110_v44, %v117_v42 }
 0x133   :  { %v158_v49 = vrot.slane %v150_v47, %v55_v36  ;;  %v126_v50 = vrot.slane %v118_v48, %v55_v36 }
 0x134   :  { %v174_v52 = vpop.permute.xlu1 %173 }
 0x135   :  { %v127_v53 = vcombine.high %v126_v50, %v126_v50  ;;  %v182_v54 = vrot.slane %v174_v52, %v117_v42  ;;  %v159_v55 = vcombine.high %v158_v49, %v158_v49 }
 0x137   :  { %v131_v56 = vsel %vm101_vm5, %v127_v53, %v72_v51  ;;  %v190_v57 = vrot.slane %v182_v54, %v55_v36 }
 0x138   :  { %v163_v60 = vsel %vm133_vm7, %v159_v55, %v131_v56 }
 0x139   :  { %v191_v58 = vcombine.high %v190_v57, %v190_v57 }
 0x13b   :  { %v195_v61 = vsel %vm165_vm8, %v191_v58, %v163_v60 }
 0x13c   :  { %v198_v62 = vcombine.low %v71_v59, %v195_v61 }
 0x13e   :  { %v205_v63 = vrot.slane %v198_v62, %v55_v36 }
 0x140   :  { %210 = vst.msk [vmem:[#allocation5] sm:$0xf] %vm209_vm11, %v205_v63 }
 0x141   :  { %282 = shalt.err (!%p279_p12)
}
 0x142   :  { %s283_s25 = scalar_lea.hbm %s340_s1, 64 }
 0x143   :  { %p284_p13 = scmp.ne.s32.totalorder %s340_s1, %s283_s25  ;;  %p287_p0 = scmp.lt.u32.totalorder %s283_s25, %s340_s1 }
 0x145   :  { %p289_p1 = pnand %p287_p0, %p284_p13 }
 0x147   :  { %292 = shalt.err (!%p289_p1)
}
 0x148   :  { %220 = dma.vmem_to_hbm [thread:$0]  %s218_s21, 64, %s340_s1, [#allocation4]  }
 0x149   :  { %295 = dma.done.wait [#allocation4], 64  }
 0x14a   :  { %296 = vsyncadd [#allocation4], 4294967232 }
 0x14b   :  { %224 = vsyncpa [#allocation3], 1 }
 0x14c   :  { %225 = vsyncpa [#allocation4], 1 }

</bundles_post_ra>
